<compile_context>
chip_gen: v7x
topology: tpu7x:2x2x1
jax: 0.10.0
libtpu: 0.0.40
codegen_flags: <defaults>
</compile_context>

<pallas_src>
import jax
import jax.numpy as jnp
from jax import lax
from jax.experimental import pallas as pl
from jax.experimental.pallas import tpu as pltpu


def _round_up(x, m):
    return (x + m - 1) // m * m


# ---------------------------------------------------------------------------
# Pass 1: conv matmul per row tile + per-channel sum / sumsq accumulation.
# ---------------------------------------------------------------------------
def conv_stats_kernel(p_ref, w_ref, conv_ref, stats_ref):
    @pl.when(pl.program_id(0) == 0)
    def _init():
        stats_ref[...] = jnp.zeros_like(stats_ref)

    # (tile_m, Kp) x (Kp, Cp) on the MXU, f32 accumulation.
    acc = jnp.dot(p_ref[...], w_ref[...], preferred_element_type=jnp.float32)

    # Store bf16 conv activations for pass 2; compute stats from the quantized
    # values so pass 2 normalizes with exactly-consistent statistics.
    acc_q = acc.astype(conv_ref.dtype)
    conv_ref[...] = acc_q
    a32 = acc_q.astype(jnp.float32)

    # Zero-padded M rows have all-zero patches -> exactly-zero conv rows (no
    # bias), so they contribute nothing to sum/sumsq; no masking needed.
    s = jnp.sum(a32, axis=0, keepdims=True)            # (1, Cp)
    sq = jnp.sum(a32 * a32, axis=0, keepdims=True)     # (1, Cp)
    stats_ref[0:1, :] = stats_ref[0:1, :] + s
    stats_ref[1:2, :] = stats_ref[1:2, :] + sq


# ---------------------------------------------------------------------------
# Pass 2: single FMA (mean folded into shift) + ReLU, lane-dense stores.
# ---------------------------------------------------------------------------
def normalize_relu_kernel(conv_ref, ss_ref, o_ref):
    y = conv_ref[...].astype(jnp.float32) * ss_ref[0:1, :] + ss_ref[1:2, :]
    o_ref[...] = jnp.maximum(y, 0.0).astype(o_ref.dtype)


def block_forward(x_nchw, w_oihw, bias, gamma, beta, *, dilation, eps=1e-5,
                  tile_m=None, vmem_limit_bytes=48 * 1024 * 1024):
    """Forward pass of Block (conv -> BN(train stats) -> ReLU). NCHW in/out."""
    N, Cin, H, W = x_nchw.shape
    Cout = w_oihw.shape[0]
    # Conv bias is exactly cancelled by training-mode BatchNorm mean subtraction.
    del bias

    pad = dilation  # kernel 3, stride 1, dilation d -> 'same' pad = d per side

    # ---- XLA-side glue: layout, padding, im2col, weight reshape ----
    # TODO(synk): for moderate/large Cin, replace this HBM-materialized 9x
    # im2col with an in-kernel halo'd row-band DMA and 3 accumulating K=3*Cin
    # matmuls (cheap on v7x MRB, grouped on v5e/v6e).
    x = jnp.transpose(x_nchw, (0, 2, 3, 1))                           # NHWC
    xp = jnp.pad(x, ((0, 0), (pad, pad), (pad, pad), (0, 0)))
    taps = [xp[:, kh * dilation:kh * dilation + H, kw * dilation:kw * dilation + W, :]
            for kh in range(3) for kw in range(3)]
    K = 9 * Cin
    M = N * H * W
    patches = jnp.concatenate(taps, axis=-1).reshape(M, K)

    # Weights: OIHW -> (KH, KW, Cin, Cout) -> (9*Cin, Cout), matching tap order.
    wk = jnp.transpose(w_oihw, (2, 3, 1, 0)).reshape(K, Cout)

    # Lane-dense padding of K and Cout; bf16 MXU operands.
    Kp = _round_up(K, 128)
    Cp = _round_up(Cout, 128)
    patches = jnp.pad(patches, ((0, 0), (0, Kp - K))).astype(jnp.bfloat16)
    wk = jnp.pad(wk, ((0, Kp - K), (0, Cp - Cout))).astype(jnp.bfloat16)

    # Row tile sized against a conservative VMEM budget (fits v5e's 16 MiB
    # default scoped VMEM and v7x's 64 MiB physical VMEM, double-buffered).
    if tile_m is None:
        budget = 16 * 1024 * 1024
        bytes_per_row = 2 * (Kp * 2 + Cp * 2) + 2 * Cp * 4
        tile_m = max(16, min(1024, budget // bytes_per_row))
        tile_m = (tile_m // 16) * 16
    tile_m = min(tile_m, _round_up(M, 16))
    Mp = _round_up(M, tile_m)
    patches = jnp.pad(patches, ((0, Mp - M), (0, 0)))
    num_tiles = Mp // tile_m

    conv2d, stats = pl.pallas_call(
        conv_stats_kernel,
        grid=(num_tiles,),
        in_specs=[
            pl.BlockSpec((tile_m, Kp), lambda i: (i, 0)),
            pl.BlockSpec((Kp, Cp), lambda i: (0, 0)),        # resident weights
        ],
        out_specs=(
            pl.BlockSpec((tile_m, Cp), lambda i: (i, 0)),
            pl.BlockSpec((8, Cp), lambda i: (0, 0)),          # resident stats acc
        ),
        out_shape=(
            jax.ShapeDtypeStruct((Mp, Cp), jnp.bfloat16),
            jax.ShapeDtypeStruct((8, Cp), jnp.float32),
        ),
        compiler_params=pltpu.CompilerParams(
            dimension_semantics=("arbitrary",),               # cross-tile reduction
            vmem_limit_bytes=vmem_limit_bytes,
        ),
    )(patches, wk)

    # Finalize BN stats with the TRUE element count M; fold mean into the shift
    # so pass 2 is a single FMA:  y = conv * scale + shift.
    inv_m = 1.0 / float(M)
    mean = stats[0] * inv_m
    var = jnp.maximum(stats[1] * inv_m - mean * mean, 0.0)
    gamma_p = jnp.pad(gamma.astype(jnp.float32), (0, Cp - Cout))
    beta_p = jnp.pad(beta.astype(jnp.float32), (0, Cp - Cout))
    scale = gamma_p * lax.rsqrt(var + eps)
    shift = beta_p - mean * scale
    scale_shift = jnp.zeros((8, Cp), jnp.float32).at[0].set(scale).at[1].set(shift)

    out2d = pl.pallas_call(
        normalize_relu_kernel,
        grid=(num_tiles,),
        in_specs=[
            pl.BlockSpec((tile_m, Cp), lambda i: (i, 0)),
            pl.BlockSpec((8, Cp), lambda i: (0, 0)),          # resident scale/shift
        ],
        out_specs=pl.BlockSpec((tile_m, Cp), lambda i: (i, 0)),
        out_shape=jax.ShapeDtypeStruct((Mp, Cp), jnp.float32),
        compiler_params=pltpu.CompilerParams(
            dimension_semantics=("parallel",),                # shards v7x's 2 TCs
            vmem_limit_bytes=vmem_limit_bytes,
        ),
    )(conv2d, scale_shift)

    # TODO(synk): downstream NHWC/bf16 consumers could take out2d[:M, :Cout]
    # directly and skip this slice + reshape + transpose writeback.
    out = out2d[:M, :Cout].reshape(N, H, W, Cout)
    return jnp.transpose(out, (0, 3, 1, 2))                   # back to NCHW


def block_reference(x, w, bias, gamma, beta, *, dilation, eps=1e-5):
    """Pure-JAX f32 reference matching PyTorch Block.forward (training-mode BN)."""
    y = jax.lax.conv_general_dilated(
        x, w, window_strides=(1, 1), padding="SAME",
        rhs_dilation=(dilation, dilation),
        dimension_numbers=("NCHW", "OIHW", "NCHW"))
    y = y + bias.reshape(1, -1, 1, 1)
    mean = jnp.mean(y, axis=(0, 2, 3), keepdims=True)
    var = jnp.var(y, axis=(0, 2, 3), keepdims=True)
    y = (y - mean) / jnp.sqrt(var + eps)
    y = y * gamma.reshape(1, -1, 1, 1) + beta.reshape(1, -1, 1, 1)
    return jnp.maximum(y, 0.0)


if __name__ == "__main__":
    # Small shapes consistent with the module (square image, 3x3 dilated conv).
    N, Cin, Cout, H, W = 2, 4, 8, 16, 16
    dilation = 2

    key = jax.random.PRNGKey(0)
    kx, kw, kb, kg, kbe = jax.random.split(key, 5)
    x = jax.random.normal(kx, (N, Cin, H, W), jnp.float32)
    w = jax.random.normal(kw, (Cout, Cin, 3, 3), jnp.float32) * 0.1   # Conv2d weight (OIHW)
    bias = jax.random.normal(kb, (Cout,), jnp.float32) * 0.1          # Conv2d bias
    gamma = 1.0 + 0.1 * jax.random.normal(kg, (Cout,), jnp.float32)   # BatchNorm weight
    beta = 0.1 * jax.random.normal(kbe, (Cout,), jnp.float32)         # BatchNorm bias

    # tile_m=128 -> grid=(4,) so the multi-tile stats accumulation path is exercised.
    out = block_forward(x, w, bias, gamma, beta, dilation=dilation, tile_m=128)
    out = jax.block_until_ready(out)

    ref = block_reference(x, w, bias, gamma, beta, dilation=dilation)
    assert out.shape == (N, Cout, H, W)
    # bf16 MXU operands + bf16 conv intermediate -> loosened tolerance vs f32 ref.
    max_err = float(jnp.max(jnp.abs(out - ref)))
    assert jnp.allclose(out, ref, rtol=5e-2, atol=5e-2), f"mismatch vs reference (max abs err {max_err})"

    print("KERNEL_OK")
</pallas_src>

<mosaic_0001>
module attributes {stable_mosaic.version = 11 : i64} {
  func.func @conv_stats_kernel(%arg0: i32, %arg1: memref<128x128xbf16, #tpu.memory_space<vmem>>, %arg2: memref<128x128xbf16, #tpu.memory_space<vmem>>, %arg3: memref<128x128xbf16, #tpu.memory_space<vmem>>, %arg4: memref<8x128xf32, #tpu.memory_space<vmem>>) attributes {dimension_semantics = [#tpu.dimension_semantics<arbitrary>], iteration_bounds = array<i64: 4>, scalar_prefetch = 0 : i64, scratch_operands = 0 : i64, tpu.core_type = #tpu.core_type<tc>, window_params = [{transform_indices = @transform_0, window_bounds = array<i64: 128, 128>}, {pipeline_mode = #tpu.pipeline_mode<synchronous>, transform_indices = @transform_1, window_bounds = array<i64: 128, 128>}, {transform_indices = @transform_2, window_bounds = array<i64: 128, 128>}, {pipeline_mode = #tpu.pipeline_mode<synchronous>, transform_indices = @transform_3, window_bounds = array<i64: 8, 128>}]} {
    %c0_i32 = arith.constant 0 : i32
    %0 = arith.cmpi eq, %arg0, %c0_i32 : i32
    %1 = arith.extui %0 : i1 to i32
    %c0_i32_0 = arith.constant 0 : i32
    %2 = arith.cmpi ne, %1, %c0_i32_0 : i32
    scf.if %2 {
      %cst_15 = arith.constant 0.000000e+00 : f32
      %20 = vector.broadcast %cst_15 : f32 to vector<8x128xf32>
      %c0_16 = arith.constant 0 : index
      %c0_17 = arith.constant 0 : index
      %21 = vector.load %arg4[%c0_16, %c0_17] : memref<8x128xf32, #tpu.memory_space<vmem>>, vector<8x128xf32>
      tpu.vector_store %arg4[%c0_16, %c0_17], %20 {strides = array<i32>} : memref<8x128xf32, #tpu.memory_space<vmem>>, vector<8x128xf32>,
    } else {
    }
    %c0 = arith.constant 0 : index
    %c0_1 = arith.constant 0 : index
    %3 = vector.load %arg1[%c0, %c0_1] : memref<128x128xbf16, #tpu.memory_space<vmem>>, vector<128x128xbf16>
    %c0_2 = arith.constant 0 : index
    %c0_3 = arith.constant 0 : index
    %4 = vector.load %arg2[%c0_2, %c0_3] : memref<128x128xbf16, #tpu.memory_space<vmem>>, vector<128x128xbf16>
    %cst = arith.constant dense<0.000000e+00> : vector<128x128xf32>
    %5 = tpu.matmul %3, %4, %cst {dimension_numbers = #tpu.dot_dimension_numbers<[1], [0], [0], [1], [0, 0, 1, 1], [], []>} : vector<128x128xbf16>, vector<128x128xbf16>, vector<128x128xf32> -> vector<128x128xf32>
    %6 = arith.truncf %5 : vector<128x128xf32> to vector<128x128xbf16>
    %c0_4 = arith.constant 0 : index
    %c0_5 = arith.constant 0 : index
    %7 = vector.load %arg3[%c0_4, %c0_5] : memref<128x128xbf16, #tpu.memory_space<vmem>>, vector<128x128xbf16>
    tpu.vector_store %arg3[%c0_4, %c0_5], %6 {strides = array<i32>} : memref<128x128xbf16, #tpu.memory_space<vmem>>, vector<128x128xbf16>,
    %8 = arith.extf %6 : vector<128x128xbf16> to vector<128x128xf32>
    %cst_6 = arith.constant dense<0.000000e+00> : vector<128xf32>
    %9 = vector.multi_reduction <add>, %8, %cst_6 [0] : vector<128x128xf32> to vector<128xf32>
    %10 = vector.shape_cast %9 : vector<128xf32> to vector<1x128xf32>
    %11 = arith.mulf %8, %8 : vector<128x128xf32>
    %cst_7 = arith.constant dense<0.000000e+00> : vector<128xf32>
    %12 = vector.multi_reduction <add>, %11, %cst_7 [0] : vector<128x128xf32> to vector<128xf32>
    %13 = vector.shape_cast %12 : vector<128xf32> to vector<1x128xf32>
    %c0_8 = arith.constant 0 : index
    %c0_9 = arith.constant 0 : index
    %14 = vector.load %arg4[%c0_8, %c0_9] : memref<8x128xf32, #tpu.memory_space<vmem>>, vector<1x128xf32>
    %15 = arith.addf %14, %10 : vector<1x128xf32>
    %c0_10 = arith.constant 0 : index
    %c0_11 = arith.constant 0 : index
    %16 = vector.load %arg4[%c0_10, %c0_11] : memref<8x128xf32, #tpu.memory_space<vmem>>, vector<1x128xf32>
    tpu.vector_store %arg4[%c0_10, %c0_11], %15 {strides = array<i32>} : memref<8x128xf32, #tpu.memory_space<vmem>>, vector<1x128xf32>,
    %c1 = arith.constant 1 : index
    %c0_12 = arith.constant 0 : index
    %17 = vector.load %arg4[%c1, %c0_12] : memref<8x128xf32, #tpu.memory_space<vmem>>, vector<1x128xf32>
    %18 = arith.addf %17, %13 : vector<1x128xf32>
    %c1_13 = arith.constant 1 : index
    %c0_14 = arith.constant 0 : index
    %19 = vector.load %arg4[%c1_13, %c0_14] : memref<8x128xf32, #tpu.memory_space<vmem>>, vector<1x128xf32>
    tpu.vector_store %arg4[%c1_13, %c0_14], %18 {strides = array<i32>} : memref<8x128xf32, #tpu.memory_space<vmem>>, vector<1x128xf32>,
    return
  }
  func.func @transform_0(%arg0: i32) -> (i32, i32) {
    %c0_i32 = arith.constant 0 : i32
    %c0_i32_0 = arith.constant 0 : i32
    return %arg0, %c0_i32 : i32, i32
  }
  func.func @transform_1(%arg0: i32) -> (i32, i32) {
    %c0_i32 = arith.constant 0 : i32
    %c0_i32_0 = arith.constant 0 : i32
    %c0_i32_1 = arith.constant 0 : i32
    return %c0_i32, %c0_i32_0 : i32, i32
  }
  func.func @transform_2(%arg0: i32) -> (i32, i32) {
    %c0_i32 = arith.constant 0 : i32
    %c0_i32_0 = arith.constant 0 : i32
    return %arg0, %c0_i32 : i32, i32
  }
  func.func @transform_3(%arg0: i32) -> (i32, i32) {
    %c0_i32 = arith.constant 0 : i32
    %c0_i32_0 = arith.constant 0 : i32
    %c0_i32_1 = arith.constant 0 : i32
    return %c0_i32, %c0_i32_0 : i32, i32
  }
}

</mosaic_0001>

<bundles_post_ra>
// kernel: tpu_custom_call.1
= control target key start
LH: loop header
LB: loop body
LE: loop exit
PB: predicated region body
PF: predicated region fallthrough
CT: control target
= control target key end

     0   :  { %9 = vsyncpa [#allocation3], 0  ;;  %s1433_s0 = inlined_call_operand.hbm [shape: bf16[512,128], index: 0, kind: input, shape index: {}]   ;;  %s1434_s1 = inlined_call_operand.hbm [shape: bf16[128,128], index: 1, kind: input, shape index: {}]   ;;  %s1435_s2 = inlined_call_operand.hbm [shape: bf16[512,128], index: 2, kind: output, shape index: {0}]   ;;  %s1436_s3 = inlined_call_operand.hbm [shape: f32[8,128], index: 3, kind: output, shape index: {1}]  }
   0x1   :  { %11 = vsyncpa [#allocation3 + $0x1], 0 }
   0x2   :  { %12 = vsyncpa [#allocation6], 0 }
   0x3   :  { %13 = vsyncpa [#allocation4], 0 }
   0x4   :  { %15 = vsyncpa [#allocation4 + $0x1], 0 }
   0x5   :  { %16 = vsyncpa [#allocation9], 0  ;;  %s1169_s12 = smov 0   ;;  %s1171_s13 = smov 0  }
   0x6   :  { %s1173_s14 = smov 0   ;;  %s1175_s15 = smov 0  }
   0x7 LB: > { %s1190_s16 = sadd.s32 4294967295, %s1138_s15   ;;  %s715_s17 = sadd.s32 4294967294, %s1138_s15   ;;  %s1138_s15 = sphi %s1175_s15, %s1461_s15   ;;  %s1134_s14 = sphi %s1173_s14, %s1460_s14   ;;  %s1130_s13 = sphi %s1171_s13, %s1459_s13   ;;  %s1126_s12 = sphi %s1169_s12, %s1458_s12  }
   0x8   : > { %p42_p0 = scmp.ne.s32.totalorder %s1130_s13, %s1126_s12  ;;  %p1437_p1 = scmp.eq.s32.totalorder %s1190_s16, 0 }
   0x9   : > { %p93_p3 = scmp.eq.s32.totalorder %s715_s17, 3  ;;  %p716_p5 = scmp.ge.s32.totalorder %s1138_s15, 1 }
   0xa   : > { %p1199_p4 = por %p1437_p1, %p42_p0  ;;  %p121_p7 = scmp.lt.s32.totalorder %s1138_s15, 5 }
   0xb   : > { %p1204_p6 = por %p93_p3, %p42_p0  ;;  %s1140_s21 = smov [#allocation5]  }
   0xc   : > { %s1440_s18 = scalar_select %p1199_p4, 1, 0 }
   0xd   : > { %s1441_s19 = scalar_select %p1204_p6, 1, 0 }
   0xe   : > { %p1210_p9 = pnand %p716_p5, %p121_p7  ;;  %s133_s22 = sshll.u32 %s1140_s21, 4  ;;  %s134_s22 = int_to_ptr.vmem [resolvable:$true] %s133_s22 }
   0xf   : > { %s1223_s24 = sadd.s32 1, %s1138_s15   ;;  %s29_s25 = sadd.s32 1, %s1134_s14 }
  0x10   : > { %s1442_s20 = scalar_select %p1210_p9, 1, 0 }
  0x11   : > { %p907_p10 = pneg %p1210_p9  ;;  %s26_s26 = ssub.s32 %s1138_s15, %s1223_s24 }
  0x12   : > { %s980_s29 = scalar_lea.hbm %s1434_s1, 1024 }
  0x13   : > { %p1218_p11 = pnand %p907_p10, %p1437_p1  ;;  %p981_p12 = scmp.ne.s32.totalorder %s1434_s1, %s980_s29 }
  0x14   : > { %p987_p5 = scmp.lt.u32.totalorder %s980_s29, %s1434_s1 }
  0x15   : > { %p982_p13 = pneg %p1218_p11 }
  0x17   : > { %p983_p0 = pnand %p982_p13, %p981_p12 }
  0x19   : > { %p984_p3 = pneg %p983_p0 }
  0x1b   : > { %p989_p7 = pnand %p987_p5, %p984_p3 }
  0x1d   : > { %992 = shalt.err (!%p989_p7)
}
  0x1e   : > { %s993_s7 = scalar_lea.vmem %s134_s22, 1024  ;;  %p1001_p2 = scmp.lt.s32.totalorder %s134_s22, %s134_s22 }
  0x1f   : > { %p994_p10 = scmp.ne.s32.totalorder %s134_s22, %s993_s7  ;;  %p1002_p6 = scmp.lt.s32.totalorder %s993_s7, %s993_s7 }
  0x21   : > { %p996_p8 = pnand %p994_p10, %p982_p13  ;;  %p1003_p4 = por %p1002_p6, %p1001_p2 }
  0x23   : > { %p997_p1 = pneg %p996_p8 }
  0x25   : > { %p1004_p9 = pnand %p1003_p4, %p997_p1 }
  0x27   : > { %1007 = shalt.err (!%p1004_p9)
}
  0x28   : > { %s1141_s8 = smov 64   ;;  %s1142_s9 = smov 4  }
  0x29   : > { %910 = dma.hbm_to_vmem [thread:$0]  (!%p1218_p11), %s1434_s1, 1024, %s134_s22, [#allocation6], %s1141_s8, %s1141_s8, %s1142_s9  }
  0x2a   : > { %p27_p1 = scmp.eq.s32.totalorder %s26_s26, 0  ;;  %p36_p2 = scmp.ne.s32.totalorder %s1134_s14, %s1130_s13 }
  0x2b   : > { %p37_p4 = scmp.eq.s32.totalorder %s1138_s15, 0  ;;  %p920_p6 = scmp.lt.s32.totalorder %s1138_s15, 4 }
  0x2c   : > { %s1252_s17 = scalar_select %p27_p1, %s1134_s14, %s29_s25  }
  0x2d   : > { %p38_p8 = por %p37_p4, %p36_p2  ;;  %p1444_p9 = scmp.eq.s32.totalorder %s1190_s16, 3 }
  0x2e   : > { %s147_s23 = sand.u32 1, %s1134_s14   ;;  %s766_s27 = sshll.u32 %s1138_s15, 10 }
  0x2f   : > { %p1256_p12 = por %p1444_p9, %p36_p2  ;;  %s719_s28 = sshll.u32 %s147_s23, 6 }
  0x30   : > { %s1265_s4 = scalar_lea.hbm %s1433_s0, %s766_s27  ;;  %s151_s22 = scalar_lea.vmem [#allocation2], %s719_s28 }
  0x31   : > { %s158_s25 = sshll.u32 %s151_s22, 4  ;;  %p1267_p11 = pnand %p920_p6, %p38_p8  ;;  %s1271_s25 = int_to_ptr.vmem [resolvable:$true] %s158_s25 }
  0x32   : > { %s1273_s5 = scalar_lea.sflag [#allocation3], %s147_s23  ;;  %s1008_s6 = scalar_lea.hbm %s1265_s4, 1024 }
  0x33   : > { %p1009_p13 = scmp.ne.s32.totalorder %s1265_s4, %s1008_s6  ;;  %p1010_p0 = pneg %p1267_p11 }
  0x34   : > { %s1013_s11 = scalar_lea.hbm %s1433_s0, 4096  ;;  %p1014_p7 = scmp.lt.u32.totalorder %s1265_s4, %s1433_s0 }
  0x35   : > { %p1011_p3 = pnand %p1010_p0, %p1009_p13  ;;  %p1015_p10 = scmp.lt.u32.totalorder %s1013_s11, %s1008_s6 }
  0x36   : > { %p1017_p2 = scmp.lt.u32.totalorder %s1008_s6, %s1265_s4 }
  0x37   : > { %p1012_p5 = pneg %p1011_p3  ;;  %p1016_p1 = por %p1015_p10, %p1014_p7 }
  0x39   : > { %p1018_p4 = por %p1017_p2, %p1016_p1 }
  0x3b   : > { %p1019_p6 = pnand %p1018_p4, %p1012_p5 }
  0x3d   : > { %1022 = shalt.err (!%p1019_p6)
}
  0x3e   : > { %s1023_s23 = scalar_lea.vmem %s1271_s25, 1024  ;;  %s1143_s29 = smov [#allocation2]  }
  0x3f   : > { %p1024_p8 = scmp.ne.s32.totalorder %s1271_s25, %s1023_s23  ;;  %s1028_s30 = sshll.u32 %s1143_s29, 4  ;;  %s1029_s30 = int_to_ptr.vmem [resolvable:$false] %s1028_s30 }
  0x40   : > { %s1030_s22 = scalar_lea.vmem %s1029_s30, 2048  ;;  %p1031_p3 = scmp.lt.s32.totalorder %s1271_s25, %s1029_s30 }
  0x41   : > { %p1026_p9 = pnand %p1024_p8, %p1010_p0  ;;  %p1032_p7 = scmp.lt.s32.totalorder %s1030_s22, %s1023_s23 }
  0x43   : > { %p1027_p13 = pneg %p1026_p9  ;;  %p1033_p10 = por %p1032_p7, %p1031_p3 }
  0x45   : > { %p1034_p1 = pnand %p1033_p10, %p1027_p13 }
  0x47   : > { %1037 = shalt.err (!%p1034_p1)
}
  0x48   : > { %914 = dma.hbm_to_vmem [thread:$0]  (!%p1267_p11), %s1265_s4, 1024, %s1271_s25, %s1273_s5, %s1141_s8, %s1141_s8, %s1142_s9  }
  0x49   : > { %p1447_p0 = scmp.ne.s32.totalorder %s1442_s20, 0 }
  0x4a   : > { %s1307_s6 = sand.u32 (!%p1447_p0), 1, %s1130_s13   ;;  %p1448_p5 = scmp.ne.s32.totalorder (!%p1447_p0), %s1440_s18, 0 }
  0x4b   : > { %170 = sbr.rel (%p1447_p0) target bundleno = 424 (0x1a8), region = 28  ;;  %s723_s7 = sshll.u32 (!%p1447_p0), %s1307_s6, 6 }
  0x4c   : > { %s173_s10 = scalar_lea.sflag (!%p1447_p0), [#allocation3], %s1307_s6  ;;  %s1311_s11 = scalar_lea.vmem (!%p1447_p0), [#allocation2], %s723_s7 }
  0x52   : > { %1109 = dma.done.wait (%p1448_p5), %s173_s10, 1024  }
  0x53   : > { %1111 = vsyncadd (%p1448_p5), %s173_s10, 4294966272  ;;  %p1449_p11 = scmp.eq.s32.totalorder %s1190_s16, 0 }
  0x55   : > { %1113 = dma.done.wait (%p1449_p11), [#allocation6], 1024   ;;  %p1450_p2 = pmov %p1449_p11 }
  0x56   : > { %s1321_s20 = scalar_lea.vmem [#allocation7], %s723_s7  ;;  %p1451_p4 = scmp.ne.s32.totalorder %s1190_s16, 0 }
  0x57   : > { %1115 = vsyncadd (%p1450_p2), [#allocation6], 4294966272  ;;  %v1144_v0 = vmov (!%p1451_p4), 0.0  }
  0x58   : > { %209 = sbr.rel (%p1451_p4) target bundleno = 95 (0x5f), region = 40  ;;  %210 = vst [vmem:[#allocation8] sm:$0xff] (!%p1451_p4), %v1144_v0 }
  0x5f PF: > { %v964_v1 = vld [vmem:[#allocation5] sm:$0xff]   ;;  %v965_v2 = vld [vmem:[#allocation5 + $0x8] sm:$0xff]   ;;  %v966_v3 = vld [vmem:[#allocation5 + $0x10] sm:$0xff]   ;;  %s783_s18 = sshll.u32 %s1190_s16, 10  ;;  %s610_s8 = sshll.u32 %s1321_s20, 4  ;;  %s1352_s8 = int_to_ptr.vmem [resolvable:$true] %s610_s8 }
  0x60   : > { %847 = vmatprep.subr.bf16.mxu0 %v964_v1  ;;  %879 = vmatprep.subr.bf16.mxu1 %v964_v1  ;;  %v967_v4 = vld [vmem:[#allocation5 + $0x18] sm:$0xff]   ;;  %v972_v5 = vld [vmem:[%s1311_s11] sm:$0xff]   ;;  %v969_v8 = vld [vmem:[#allocation5 + $0x28] sm:$0xff]   ;;  %s1350_s25 = scalar_lea.hbm %s1435_s2, %s783_s18  ;;  %s597_s26 = scalar_lea.sflag [#allocation4], %s1307_s6 }
  0x61   : > { %848 = vmatpush3.bf16.msra.mxu0 %v964_v1  ;;  %887 = vmatpush3.bf16.msra.mxu1 %v964_v1  ;;  %v968_v6 = vld [vmem:[#allocation5 + $0x20] sm:$0xff]   ;;  %v970_v9 = vld [vmem:[#allocation5 + $0x30] sm:$0xff]   ;;  %v971_v10 = vld [vmem:[#allocation5 + $0x38] sm:$0xff]   ;;  %s1038_s5 = scalar_lea.vmem %s1352_s8, 1024  ;;  %s1145_s27 = smov [#allocation7]  }
  0x62   : > { %849 = vmatprep.subr.bf16.mxu0 %v965_v2  ;;  %880 = vmatprep.subr.bf16.mxu1 %v965_v2  ;;  %v976_v7 = vld [vmem:[%s1311_s11 + $0x20] sm:$0xff]   ;;  %v973_v11 = vld [vmem:[%s1311_s11 + $0x8] sm:$0xff]   ;;  %v974_v13 = vld [vmem:[%s1311_s11 + $0x10] sm:$0xff]   ;;  %p1039_p6 = scmp.ne.s32.totalorder %s1352_s8, %s1038_s5  ;;  %s1042_s28 = sshll.u32 %s1145_s27, 4  ;;  %s1043_s28 = int_to_ptr.vmem [resolvable:$false] %s1042_s28 }
  0x63   : > { %863 = vmatprep.mubr.bf16.mxu0 %v972_v5  ;;  %871 = vmatprep.mubr.bf16.mxu1 %v976_v7  ;;  %v977_v12 = vld [vmem:[%s1311_s11 + $0x28] sm:$0xff]   ;;  %v978_v14 = vld [vmem:[%s1311_s11 + $0x30] sm:$0xff]   ;;  %v975_v15 = vld [vmem:[%s1311_s11 + $0x18] sm:$0xff]   ;;  %s1044_s23 = scalar_lea.vmem %s1043_s28, 2048  ;;  %p1045_p13 = scmp.lt.s32.totalorder %s1352_s8, %s1043_s28 }
  0x64   : > { %v979_v16 = vld [vmem:[%s1311_s11 + $0x38] sm:$0xff]   ;;  %p1040_p8 = pnand %p1039_p6, %p1256_p12  ;;  %p1046_p3 = scmp.lt.s32.totalorder %s1044_s23, %s1038_s5 }
  0x65   : > { %850 = vmatpush3.bf16.msra.mxu0 %v965_v2  ;;  %888 = vmatpush3.bf16.msra.mxu1 %v965_v2 }
  0x66   : > { %851 = vmatprep.subr.bf16.mxu0 %v966_v3  ;;  %881 = vmatprep.subr.bf16.mxu1 %v966_v3  ;;  %p1041_p9 = pneg %p1040_p8  ;;  %p1047_p7 = por %p1046_p3, %p1045_p13 }
  0x68   : > { %p1048_p10 = pnand %p1047_p7, %p1041_p9 }
  0x69   : > { %852 = vmatpush3.bf16.msra.mxu0 %v966_v3  ;;  %889 = vmatpush3.bf16.msra.mxu1 %v966_v3 }
  0x6a   : > { %853 = vmatprep.subr.bf16.mxu0 %v967_v4  ;;  %882 = vmatprep.subr.bf16.mxu1 %v967_v4 }
  0x6d   : > { %854 = vmatpush3.bf16.msra.mxu0 %v967_v4  ;;  %890 = vmatpush3.bf16.msra.mxu1 %v967_v4 }
  0x6e   : > { %855 = vmatprep.subr.bf16.mxu0 %v968_v6  ;;  %883 = vmatprep.subr.bf16.mxu1 %v968_v6 }
  0x71   : > { %856 = vmatpush3.bf16.msra.mxu0 %v968_v6  ;;  %891 = vmatpush3.bf16.msra.mxu1 %v968_v6 }
  0x72   : > { %857 = vmatprep.subr.bf16.mxu0 %v969_v8  ;;  %884 = vmatprep.subr.bf16.mxu1 %v969_v8 }
  0x75   : > { %858 = vmatpush3.bf16.msra.mxu0 %v969_v8  ;;  %892 = vmatpush3.bf16.msra.mxu1 %v969_v8 }
  0x76   : > { %859 = vmatprep.subr.bf16.mxu0 %v970_v9  ;;  %885 = vmatprep.subr.bf16.mxu1 %v970_v9 }
  0x79   : > { %860 = vmatpush3.bf16.msra.mxu0 %v970_v9  ;;  %893 = vmatpush3.bf16.msra.mxu1 %v970_v9 }
  0x7a   : > { %861 = vmatprep.subr.bf16.mxu0 %v971_v10  ;;  %886 = vmatprep.subr.bf16.mxu1 %v971_v10 }
  0x7d   : > { %862 = vmatpush3.bf16.msra.mxu0 %v971_v10  ;;  %894 = vmatpush3.bf16.msra.mxu1 %v971_v10 }
  0x80   : > { %864 = vmatmul.mubr.bf16.vlgmr.msra.gmra.mrb[0].mxu0 %v973_v11  ;;  %872 = vmatmul.mubr.bf16.vlgmr.msra.gmra.mrb[0].mxu1 %v977_v12 }
  0x81   : > { %867 = vmatprep.mubr.bf16.mxu0 %v974_v13  ;;  %875 = vmatprep.mubr.bf16.mxu1 %v978_v14 }
  0x88   : > { %868 = vmatmul.mubr.bf16.gmra.mrb[4].mxu0 %v975_v15  ;;  %876 = vmatmul.mubr.bf16.gmra.mrb[4].mxu1 %v979_v16 }
 0x153   : > { %v865_v17 = vpop.f32.mrb[0].mxu0  ;;  %v873_v18 = vpop.f32.mrb[0].mxu1 }
 0x154   : > { %v373_v19 = vpop.f32.mrb[1].mxu0  ;;  %v405_v20 = vpop.f32.mrb[1].mxu1 }
 0x155   : > { %v866_v21 = vpop.f32.mrb[2].mxu0  ;;  %v874_v22 = vpop.f32.mrb[2].mxu1 }
 0x156   : > { %v437_v23 = vpack.c.bf16 %v866_v21, %v865_v17  ;;  %v376_v24 = vpop.f32.mrb[3].mxu0  ;;  %v1333_v25 = vpack.c.bf16 %v874_v22, %v873_v18  ;;  %v408_v26 = vpop.f32.mrb[3].mxu1 }
 0x157   : > { %v436_v27 = vpack.c.bf16 %v376_v24, %v373_v19  ;;  %v1335_v28 = vpack.c.bf16 %v408_v26, %v405_v20 }
 0x158   : > { %824 = vst [vmem:[%s1321_s20 + $0x8] sm:$0xff] %v437_v23   ;;  %828 = vst [vmem:[%s1321_s20 + $0x28] sm:$0xff] %v1333_v25   ;;  %v518_v29 = vunpack.c.l.bf16 %v437_v23  ;;  %v519_v32 = vunpack.c.h.bf16 %v437_v23 }
 0x159   : > { %788 = vst [vmem:[%s1321_s20] sm:$0xff] %v436_v27   ;;  %v516_v30 = vunpack.c.l.bf16 %v436_v27  ;;  %v517_v31 = vunpack.c.h.bf16 %v436_v27  ;;  %827 = vst [vmem:[%s1321_s20 + $0x20] sm:$0xff] %v1335_v28  }
 0x15a   : > { %v555_v40 = vmul.f32 %v518_v29, %v518_v29  ;;  %v556_v45 = vmul.f32 %v519_v32, %v519_v32 }
 0x15b   : > { %v532_v33 = vadd.f32 %v517_v31, %v516_v30  ;;  %v553_v34 = vmul.f32 %v516_v30, %v516_v30  ;;  %v554_v35 = vmul.f32 %v517_v31, %v517_v31  ;;  %v869_v36 = vpop.f32.mrb[4].mxu0  ;;  %v877_v37 = vpop.f32.mrb[4].mxu1 }
 0x15c   : > { %v389_v38 = vpop.f32.mrb[5].mxu0  ;;  %v421_v39 = vpop.f32.mrb[5].mxu1 }
 0x15d   : > { %v533_v41 = vadd.f32 %v532_v33, %v518_v29  ;;  %v569_v42 = vadd.f32 %v554_v35, %v553_v34  ;;  %v870_v43 = vpop.f32.mrb[6].mxu0  ;;  %v878_v44 = vpop.f32.mrb[6].mxu1 }
 0x15e   : > { %v439_v46 = vpack.c.bf16 %v870_v43, %v869_v36  ;;  %v392_v47 = vpop.f32.mrb[7].mxu0  ;;  %v1345_v48 = vpack.c.bf16 %v878_v44, %v877_v37  ;;  %v424_v49 = vpop.f32.mrb[7].mxu1 }
 0x15f   : > { %v570_v50 = vadd.f32 %v569_v42, %v555_v40  ;;  %v438_v51 = vpack.c.bf16 %v392_v47, %v389_v38  ;;  %v534_v52 = vadd.f32 %v533_v41, %v519_v32  ;;  %v1354_v53 = vpack.c.bf16 %v424_v49, %v421_v39 }
 0x160   : > { %826 = vst [vmem:[%s1321_s20 + $0x18] sm:$0xff] %v439_v46   ;;  %830 = vst [vmem:[%s1321_s20 + $0x38] sm:$0xff] %v1345_v48  }
 0x161   : > { %825 = vst [vmem:[%s1321_s20 + $0x10] sm:$0xff] %v438_v51   ;;  %v520_v54 = vunpack.c.l.bf16 %v438_v51  ;;  %v521_v55 = vunpack.c.h.bf16 %v438_v51  ;;  %v571_v56 = vadd.f32 %v570_v50, %v556_v45  ;;  %829 = vst [vmem:[%s1321_s20 + $0x30] sm:$0xff] %v1354_v53  }
 0x162   : > { %1051 = shalt.err (!%p1048_p10)
}
 0x163   : > { %s1052_s29 = scalar_lea.hbm %s1350_s25, 1024  ;;  %s1056_s7 = scalar_lea.hbm %s1435_s2, 4096 }
 0x164   : > { %p1053_p1 = scmp.ne.s32.totalorder %s1350_s25, %s1052_s29  ;;  %p1057_p11 = scmp.lt.u32.totalorder %s1350_s25, %s1435_s2 }
 0x165   : > { %p1058_p2 = scmp.lt.u32.totalorder %s1056_s7, %s1052_s29  ;;  %p1060_p6 = scmp.lt.u32.totalorder %s1052_s29, %s1350_s25 }
 0x166   : > { %p1054_p0 = pnand %p1053_p1, %p1256_p12 }
 0x167   : > { %p1059_p4 = por %p1058_p2, %p1057_p11 }
 0x168   : > { %p1055_p5 = pneg %p1054_p0 }
 0x169   : > { %p1061_p8 = por %p1060_p6, %p1059_p4 }
 0x16b   : > { %p1062_p9 = pnand %p1061_p8, %p1055_p5 }
 0x16d   : > { %1065 = shalt.err (!%p1062_p9)
}
 0x16e   : > { %s1146_s20 = smov 64   ;;  %s1147_s18 = smov 4   ;;  %v522_v57 = vunpack.c.l.bf16 %v439_v46  ;;  %v535_v58 = vadd.f32 %v534_v52, %v520_v54  ;;  %v557_v59 = vmul.f32 %v520_v54, %v520_v54  ;;  %v523_v60 = vunpack.c.h.bf16 %v439_v46  ;;  %v593_v51 = vld [vmem:[#allocation8 + $0x1] sm:$0x1] }
 0x16f   : > { %901 = dma.vmem_to_hbm [thread:$0]  (%p1256_p12), %s1352_s8, 1024, %s1350_s25, %s597_s26, %s1146_s20, %s1146_s20, %s1147_s18   ;;  %v558_v62 = vmul.f32 %v521_v55, %v521_v55  ;;  %v524_v3 = vunpack.c.l.bf16 %v1335_v28  ;;  %v525_v6 = vunpack.c.h.bf16 %v1335_v28  ;;  %v526_v8 = vunpack.c.l.bf16 %v1333_v25 }
 0x170   : > { %v536_v61 = vadd.f32 %v535_v58, %v521_v55  ;;  %v572_v63 = vadd.f32 %v571_v56, %v557_v59  ;;  %v559_v0 = vmul.f32 %v522_v57, %v522_v57  ;;  %v560_v4 = vmul.f32 %v523_v60, %v523_v60  ;;  %s1148_s21 = smov [#allocation8]   ;;  %p1452_p13 = scmp.eq.s32.totalorder %s1190_s16, 3 }
 0x171   : > { %v561_v10 = vmul.f32 %v524_v3, %v524_v3  ;;  %v527_v12 = vunpack.c.h.bf16 %v1333_v25  ;;  %v562_v14 = vmul.f32 %v525_v6, %v525_v6  ;;  %v563_v16 = vmul.f32 %v526_v8, %v526_v8  ;;  %s624_s6 = sshll.u32 %s1148_s21, 4  ;;  %s625_s6 = int_to_ptr.vmem [resolvable:$true] %s624_s6 }
 0x172   : > { %v537_v1 = vadd.f32 %v536_v61, %v522_v57  ;;  %v573_v2 = vadd.f32 %v572_v63, %v558_v62  ;;  %v528_v19 = vunpack.c.l.bf16 %v1354_v53  ;;  %v529_v22 = vunpack.c.h.bf16 %v1354_v53  ;;  %s1066_s8 = scalar_lea.vmem %s625_s6, 128  ;;  %p1073_p10 = scmp.lt.s32.totalorder %s625_s6, %s625_s6 }
 0x173   : > { %v564_v20 = vmul.f32 %v527_v12, %v527_v12  ;;  %v530_v24 = vunpack.c.l.bf16 %v1345_v48  ;;  %v531_v25 = vunpack.c.h.bf16 %v1345_v48  ;;  %v590_v48 = vld [vmem:[#allocation8] sm:$0x1]  ;;  %p1067_p12 = scmp.ne.s32.totalorder %s625_s6, %s1066_s8  ;;  %p1074_p1 = scmp.lt.s32.totalorder %s1066_s8, %s1066_s8 }
 0x174   : > { %v574_v5 = vadd.f32 %v573_v2, %v559_v0  ;;  %v538_v7 = vadd.f32 %v537_v1, %v523_v60  ;;  %v565_v27 = vmul.f32 %v528_v19, %v528_v19  ;;  %v566_v30 = vmul.f32 %v529_v22, %v529_v22 }
 0x175   : > { %v567_v32 = vmul.f32 %v530_v24, %v530_v24  ;;  %v568_v35 = vmul.f32 %v531_v25, %v531_v25  ;;  %p1068_p3 = pnand %p1067_p12, %p1452_p13  ;;  %p1075_p0 = por %p1074_p1, %p1073_p10 }
 0x176   : > { %v539_v9 = vadd.f32 %v538_v7, %v524_v3  ;;  %v575_v11 = vadd.f32 %v574_v5, %v560_v4 }
 0x177   : > { %p1069_p7 = pneg %p1068_p3 }
 0x178   : > { %v540_v13 = vadd.f32 %v539_v9, %v525_v6  ;;  %v576_v15 = vadd.f32 %v575_v11, %v561_v10 }
 0x179   : > { %p1076_p5 = pnand %p1075_p0, %p1069_p7 }
 0x17a   : > { %v541_v17 = vadd.f32 %v540_v13, %v526_v8  ;;  %v577_v18 = vadd.f32 %v576_v15, %v562_v14 }
 0x17c   : > { %v578_v21 = vadd.f32 %v577_v18, %v563_v16  ;;  %v542_v23 = vadd.f32 %v541_v17, %v527_v12 }
 0x17e   : > { %v543_v26 = vadd.f32 %v542_v23, %v528_v19  ;;  %v579_v28 = vadd.f32 %v578_v21, %v564_v20 }
 0x180   : > { %v544_v29 = vadd.f32 %v543_v26, %v529_v22  ;;  %v580_v31 = vadd.f32 %v579_v28, %v565_v27 }
 0x182   : > { %v545_v33 = vadd.f32 %v544_v29, %v530_v24  ;;  %v581_v34 = vadd.f32 %v580_v31, %v566_v30 }
 0x184   : > { %v546_v36 = vadd.f32 %v545_v33, %v531_v25  ;;  %v582_v37 = vadd.f32 %v581_v34, %v567_v32 }
 0x186   : > { %v547_v38 = vrot.slane %v546_v36, 4  ;;  %v583_v39 = vadd.f32 %v582_v37, %v568_v35 }
 0x188   : > { %v548_v40 = vadd.f32 %v547_v38, %v546_v36  ;;  %v584_v41 = vrot.slane %v583_v39, 4 }
 0x18a   : > { %v549_v42 = vrot.slane %v548_v40, 2  ;;  %v585_v43 = vadd.f32 %v584_v41, %v583_v39 }
 0x18c   : > { %v550_v44 = vadd.f32 %v549_v42, %v548_v40  ;;  %v586_v45 = vrot.slane %v585_v43, 2 }
 0x18e   : > { %v551_v46 = vrot.slane %v550_v44, 1  ;;  %v587_v47 = vadd.f32 %v586_v45, %v585_v43 }
 0x190   : > { %v552_v49 = vadd.f32 %v551_v46, %v550_v44  ;;  %v588_v50 = vrot.slane %v587_v47, 1 }
 0x192   : > { %v589_v52 = vadd.f32 %v588_v50, %v587_v47  ;;  %v591_v53 = vadd.f32 %v590_v48, %v552_v49 }
 0x194   : > { %592 = vst [vmem:[#allocation8] sm:$0x1] %v591_v53  ;;  %v594_v54 = vadd.f32 %v593_v51, %v589_v52 }
 0x196   : > { %595 = vst [vmem:[#allocation8 + $0x1] sm:$0x1] %v594_v54 }
 0x197   : > { %1079 = shalt.err (!%p1076_p5)
}
 0x198   : > { %s1080_s25 = scalar_lea.hbm %s1436_s3, 128  ;;  %p1453_p2 = pmov %p1452_p13 }
 0x199   : > { %p1081_p11 = scmp.ne.s32.totalorder %s1436_s3, %s1080_s25  ;;  %p1086_p8 = scmp.lt.u32.totalorder %s1080_s25, %s1436_s3 }
 0x19b   : > { %p1082_p4 = pnand %p1081_p11, %p1453_p2 }
 0x19d   : > { %p1083_p6 = pneg %p1082_p4 }
 0x19f   : > { %p1088_p9 = pnand %p1086_p8, %p1083_p6 }
 0x1a1   : > { %1091 = shalt.err (!%p1088_p9)
}
 0x1a2   : > { %p1454_p12 = pmov %p1453_p2  ;;  %p1455_p13 = pmov %p1453_p2 }
 0x1a4   : > { %903 = dma.vmem_to_hbm [thread:$0]  (%p1454_p12), %s625_s6, 128, %s1436_s3, [#allocation9]  }
 0x1a5   : > { %1117 = dma.done.wait (%p1455_p13), [#allocation9], 128   ;;  %p1456_p3 = pmov %p1453_p2 }
 0x1a7   : > { %1119 = vsyncadd (%p1456_p3), [#allocation9], 4294967168 }
 0x1a8 PF: > { %p924_p7 = scmp.ge.s32.totalorder %s1138_s15, 2  ;;  %s640_s30 = sand.u32 1, %s1126_s12  }
 0x1a9   : > { %p1457_p10 = scmp.ne.s32.totalorder %s1441_s19, 0  ;;  %s641_s22 = scalar_lea.sflag [#allocation4], %s640_s30 }
 0x1ab   : > { %p916_p1 = pnand %p924_p7, %p1457_p10 }
 0x1ad   : > { %1121 = dma.done.wait (!%p916_p1), %s641_s22, 1024  }
 0x1ae   : > { %1123 = vsyncadd (!%p916_p1), %s641_s22, 4294966272  ;;  %p19_p0 = scmp.ge.s32.totalorder %s1223_s24, 6   ;;  %s1458_s12 = smov %s1130_s13 }
 0x1af   : > { %s1459_s13 = smov %s1134_s14  ;;  %s1460_s14 = smov %s1252_s17 }
 0x1b0   : > { %s1461_s15 = smov %s1223_s24  ;;  %21 = sbr.rel (!%p19_p0) target bundleno = 7 (0x7), region = 89 }
 0x1b7   :  { %646 = vsyncpa [#allocation3], 1 }
 0x1b8   :  { %648 = vsyncpa [#allocation3 + $0x1], 1 }
 0x1b9   :  { %649 = vsyncpa [#allocation6], 1 }
 0x1ba   :  { %650 = vsyncpa [#allocation4], 1 }
 0x1bb   :  { %652 = vsyncpa [#allocation4 + $0x1], 1 }
 0x1bc   :  { %653 = vsyncpa [#allocation9], 1 }

</bundles_post_ra>
